<compile_context>
chip_gen: v6e
topology: v6e:2x2x1
jax: 0.10.0
libtpu: 0.0.40
codegen_flags: <defaults>
</compile_context>

<pallas_src>
import math

import jax
import jax.numpy as jnp
from jax.experimental import pallas as pl
from jax.experimental.pallas import tpu as pltpu


def _gelu_exact(x):
    # torch nn.GELU() default: exact erf formulation (f32 elementwise)
    return 0.5 * x * (1.0 + jax.lax.erf(x * (1.0 / math.sqrt(2.0))))


def _round_up(x, m):
    return ((x + m - 1) // m) * m


def dino_head_kernel(x_ref, w1_ref, b1_ref, w2_ref, b2_ref, w3_ref, b3_ref,
                     v_ref, invcol_ref, o_ref, h_scratch):
    # --- MLP + normalize: compute once per batch tile (amortized over out tiles) ---
    @pl.when(pl.program_id(1) == 0)
    def _compute_bottleneck():
        x = x_ref[...]                                   # bf16 (pre-cast in wrapper)
        h = jnp.dot(x, w1_ref[...], preferred_element_type=jnp.float32)
        h = _gelu_exact(h + b1_ref[...])
        h = jnp.dot(h.astype(jnp.bfloat16), w2_ref[...],
                    preferred_element_type=jnp.float32)
        h = _gelu_exact(h + b2_ref[...])
        h = jnp.dot(h.astype(jnp.bfloat16), w3_ref[...],
                    preferred_element_type=jnp.float32)
        h = h + b3_ref[...]
        # F.normalize(h, dim=-1, p=2): rsqrt on the squared norm (EUP slot),
        # clamp sum-of-squares at 1e-24 == clamping ||h|| at 1e-12 for h != 0.
        inv_norm = jax.lax.rsqrt(
            jnp.maximum(jnp.sum(h * h, axis=-1, keepdims=True), 1e-24))
        h_scratch[...] = (h * inv_norm).astype(jnp.bfloat16)

    # --- weight-normalized last layer (no bias), per out_dim tile ---
    # v is stored transposed (bottleneck, TN); the per-output-row scale
    # g / ||v_row|| was precomputed in the wrapper as invcol (1, TN), so the
    # inner body is just one MXU matmul + a column scale of the f32 accumulator.
    y = jnp.dot(h_scratch[...], v_ref[...], preferred_element_type=jnp.float32)
    o_ref[...] = (y * invcol_ref[...]).astype(o_ref.dtype)


def dino_head_forward(x, params, *, tm=None, tn=None, out_dtype=jnp.bfloat16):
    n, in_dim = x.shape
    hidden = params["w1_t"].shape[1]
    bottleneck = params["w3_t"].shape[1]
    out_dim = params["v_t"].shape[1]

    # Tile sizes: batch tile (MXU rows), lane-dense out tile (multiple of 128).
    if tm is None:
        tm = min(512, _round_up(n, 8))
        # v7x has 2 TensorCores; keep >= 2 batch tiles when N allows so the
        # "parallel" batch axis actually shards work across both cores.
        if n > 16 and _round_up(n, tm) // tm < 2:
            tm = max(8, _round_up(-(-n // 2), 8))
    if tn is None:
        tn = min(4096, _round_up(out_dim, 128))

    n_pad = _round_up(n, tm)
    out_pad = _round_up(out_dim, tn)

    # Pre-cast x to bf16 (it is consumed as a bf16 MXU operand anyway); halves
    # the x DMA + its double-buffered VMEM tile.
    x_p = x.astype(jnp.bfloat16)
    if n_pad != n:
        x_p = jnp.pad(x_p, ((0, n_pad - n), (0, 0)))

    # Hoisted weight-norm column scale: inv_col = g * rsqrt(sum(v^2, axis=0)).
    # Computed once in plain JAX (f32).  NOTE: PyTorch weight_norm divides by
    # the exact norm (no clamp); the 1e-24 clamp only differs for an all-zero
    # weight column.  Padded columns get inv_col == 0 so the sliced-away region
    # stays finite.
    v_f32 = params["v_t"].astype(jnp.float32)
    inv_col = params["g"] * jax.lax.rsqrt(
        jnp.maximum(jnp.sum(v_f32 * v_f32, axis=0, keepdims=True), 1e-24))

    v_p = params["v_t"]
    if out_pad != out_dim:
        v_p = jnp.pad(v_p, ((0, 0), (0, out_pad - out_dim)))
        inv_col = jnp.pad(inv_col, ((0, 0), (0, out_pad - out_dim)))

    grid = (n_pad // tm, out_pad // tn)

    # Grid-invariant MLP weights/biases: constant index_map + single buffer
    # (they are DMA'd once and stay VMEM-resident; double-buffering them would
    # waste ~12+ MiB at DINO-typical hidden=2048).
    def const_spec(shape):
        return pl.BlockSpec(shape, lambda i, j: (0, 0),
                            pipeline_mode=pl.Buffered(1))

    kernel = pl.pallas_call(
        dino_head_kernel,
        out_shape=jax.ShapeDtypeStruct((n_pad, out_pad), out_dtype),
        grid_spec=pltpu.PrefetchScalarGridSpec(
            num_scalar_prefetch=0,
            grid=grid,
            in_specs=[
                # activations: tiled along the batch grid axis
                pl.BlockSpec((tm, in_dim), lambda i, j: (i, 0)),
                # MLP weights / biases: VMEM-resident, single-buffered
                const_spec((in_dim, hidden)),
                const_spec((1, hidden)),
                const_spec((hidden, hidden)),
                const_spec((1, hidden)),
                const_spec((hidden, bottleneck)),
                const_spec((1, bottleneck)),
                # weight-norm v / precomputed column scale: tiled along out_dim
                pl.BlockSpec((bottleneck, tn), lambda i, j: (0, j)),
                pl.BlockSpec((1, tn), lambda i, j: (0, j)),
            ],
            out_specs=pl.BlockSpec((tm, tn), lambda i, j: (i, j)),
            # persistent normalized bottleneck activation (bf16) for the current
            # batch tile
            scratch_shapes=[pltpu.VMEM((tm, bottleneck), jnp.bfloat16)],
        ),
        compiler_params=pltpu.CompilerParams(
            # batch tiles are independent (megacore-shardable); out axis carries
            # the h-scratch so it must stay "arbitrary".
            dimension_semantics=("parallel", "arbitrary"),
            vmem_limit_bytes=48 * 1024 * 1024,
        ),
    )
    y = kernel(x_p,
               params["w1_t"], params["b1"],
               params["w2_t"], params["b2"],
               params["w3_t"], params["b3"],
               v_p, inv_col)
    y = y[:n, :out_dim]
    # last_layer2 is the same module as last_layer -> identical output, no 2nd store
    return y, y


def init_params(key, in_dim, hidden_dim, bottleneck_dim, out_dim):
    """Deterministic synthetic init mirroring the module shapes.

    Linear weights ~ trunc_normal(std=0.02) (as in _init_weights), biases = 0,
    weight_norm v ~ trunc_normal(std=0.02), weight_g = 1.
    Weights stored transposed (in, out) and in bf16 (MXU operands);
    biases / g stay f32.
    """
    ks = jax.random.split(key, 4)

    def tn(k, shape, std=0.02):
        w = std * jax.random.truncated_normal(k, -2.0, 2.0, shape, jnp.float32)
        return w.astype(jnp.bfloat16)

    return {
        "w1_t": tn(ks[0], (in_dim, hidden_dim)),
        "b1": jnp.zeros((1, hidden_dim), jnp.float32),
        "w2_t": tn(ks[1], (hidden_dim, hidden_dim)),
        "b2": jnp.zeros((1, hidden_dim), jnp.float32),
        "w3_t": tn(ks[2], (hidden_dim, bottleneck_dim)),
        "b3": jnp.zeros((1, bottleneck_dim), jnp.float32),
        "v_t": tn(ks[3], (bottleneck_dim, out_dim)),
        "g": jnp.ones((1, out_dim), jnp.float32),
    }


def _reference(x, p):
    # pure-JAX f32 reference (weights upcast from bf16)
    w1 = p["w1_t"].astype(jnp.float32)
    w2 = p["w2_t"].astype(jnp.float32)
    w3 = p["w3_t"].astype(jnp.float32)
    v = p["v_t"].astype(jnp.float32)
    h = _gelu_exact(x @ w1 + p["b1"])
    h = _gelu_exact(h @ w2 + p["b2"])
    h = h @ w3 + p["b3"]
    h = h / jnp.maximum(jnp.linalg.norm(h, axis=-1, keepdims=True), 1e-12)
    inv_col = p["g"] / jnp.sqrt(jnp.sum(v * v, axis=0, keepdims=True))
    y = (h @ v) * inv_col
    return y, y


if __name__ == "__main__":
    # small shapes consistent with the module (in_dim -> hidden -> hidden -> bottleneck -> out)
    batch, in_dim, hidden_dim, bottleneck_dim, out_dim = 13, 32, 64, 128, 256

    key = jax.random.PRNGKey(0)
    kx, kp = jax.random.split(key)
    x = jax.random.normal(kx, (batch, in_dim), jnp.float32)
    params = init_params(kp, in_dim, hidden_dim, bottleneck_dim, out_dim)

    # Small tiles so the demo exercises the 2-D grid, the pl.when/h-scratch path
    # and the batch-padding path (13 -> padded to 16).
    x1, x2 = dino_head_forward(x, params, tm=8, tn=128)
    jax.block_until_ready((x1, x2))

    r1, r2 = _reference(x, params)
    assert x1.shape == (batch, out_dim) and x2.shape == (batch, out_dim)
    # bf16 MXU operands + bf16 output vs f32 reference -> loosened tolerance
    # (intentional trade-off; validate against a real checkpoint before use).
    assert jnp.allclose(x1.astype(jnp.float32), r1, atol=2e-2, rtol=2e-2)
    assert jnp.allclose(x2.astype(jnp.float32), x1.astype(jnp.float32))

    print("KERNEL_OK")
</pallas_src>

<mosaic_0001>
module attributes {stable_mosaic.version = 11 : i64} {
  func.func @dino_head_kernel(%arg0: i32, %arg1: i32, %arg2: memref<8x32xbf16, #tpu.memory_space<vmem>>, %arg3: memref<32x64xbf16, #tpu.memory_space<vmem>>, %arg4: memref<1x64xf32, #tpu.memory_space<vmem>>, %arg5: memref<64x64xbf16, #tpu.memory_space<vmem>>, %arg6: memref<1x64xf32, #tpu.memory_space<vmem>>, %arg7: memref<64x128xbf16, #tpu.memory_space<vmem>>, %arg8: memref<1x128xf32, #tpu.memory_space<vmem>>, %arg9: memref<128x128xbf16, #tpu.memory_space<vmem>>, %arg10: memref<1x128xf32, #tpu.memory_space<vmem>>, %arg11: memref<8x128xbf16, #tpu.memory_space<vmem>>, %arg12: memref<8x128xbf16, #tpu.memory_space<vmem>>) attributes {dimension_semantics = [#tpu.dimension_semantics<parallel>, #tpu.dimension_semantics<arbitrary>], iteration_bounds = array<i64: 2, 2>, scalar_prefetch = 0 : i64, scratch_operands = 1 : i64, tpu.core_type = #tpu.core_type<tc>, window_params = [{transform_indices = @transform_0, window_bounds = array<i64: 8, 32>}, {pipeline_mode = #tpu.pipeline_mode<synchronous>, transform_indices = @transform_1, window_bounds = array<i64: 32, 64>}, {pipeline_mode = #tpu.pipeline_mode<synchronous>, transform_indices = @transform_2, window_bounds = array<i64: 1, 64>}, {pipeline_mode = #tpu.pipeline_mode<synchronous>, transform_indices = @transform_3, window_bounds = array<i64: 64, 64>}, {pipeline_mode = #tpu.pipeline_mode<synchronous>, transform_indices = @transform_4, window_bounds = array<i64: 1, 64>}, {pipeline_mode = #tpu.pipeline_mode<synchronous>, transform_indices = @transform_5, window_bounds = array<i64: 64, 128>}, {pipeline_mode = #tpu.pipeline_mode<synchronous>, transform_indices = @transform_6, window_bounds = array<i64: 1, 128>}, {transform_indices = @transform_7, window_bounds = array<i64: 128, 128>}, {transform_indices = @transform_8, window_bounds = array<i64: 1, 128>}, {transform_indices = @transform_9, window_bounds = array<i64: 8, 128>}]} {
    %c0_i32 = arith.constant 0 : i32
    %0 = arith.cmpi eq, %arg1, %c0_i32 : i32
    %1 = arith.extui %0 : i1 to i32
    %c0_i32_0 = arith.constant 0 : i32
    %2 = arith.cmpi ne, %1, %c0_i32_0 : i32
    scf.if %2 {
      %c0_8 = arith.constant 0 : index
      %c0_9 = arith.constant 0 : index
      %11 = vector.load %arg2[%c0_8, %c0_9] : memref<8x32xbf16, #tpu.memory_space<vmem>>, vector<8x32xbf16>
      %c0_10 = arith.constant 0 : index
      %c0_11 = arith.constant 0 : index
      %12 = vector.load %arg3[%c0_10, %c0_11] : memref<32x64xbf16, #tpu.memory_space<vmem>>, vector<32x64xbf16>
      %cst_12 = arith.constant dense<0.000000e+00> : vector<8x64xf32>
      %13 = tpu.matmul %11, %12, %cst_12 {dimension_numbers = #tpu.dot_dimension_numbers<[1], [0], [0], [1], [0, 0, 1, 1], [], []>} : vector<8x32xbf16>, vector<32x64xbf16>, vector<8x64xf32> -> vector<8x64xf32>
      %c0_13 = arith.constant 0 : index
      %c0_14 = arith.constant 0 : index
      %14 = vector.load %arg4[%c0_13, %c0_14] : memref<1x64xf32, #tpu.memory_space<vmem>>, vector<1x64xf32>
      %15 = vector.broadcast %14 : vector<1x64xf32> to vector<8x64xf32>
      %16 = arith.addf %13, %15 : vector<8x64xf32>
      %cst_15 = arith.constant 5.000000e-01 : f32
      %17 = vector.broadcast %cst_15 : f32 to vector<8x64xf32>
      %18 = arith.mulf %17, %16 : vector<8x64xf32>
      %cst_16 = arith.constant 0.707106769 : f32
      %19 = vector.broadcast %cst_16 : f32 to vector<8x64xf32>
      %20 = arith.mulf %16, %19 : vector<8x64xf32>
      %21 = math.erf %20 : vector<8x64xf32>
      %cst_17 = arith.constant 1.000000e+00 : f32
      %22 = vector.broadcast %cst_17 : f32 to vector<8x64xf32>
      %23 = arith.addf %22, %21 : vector<8x64xf32>
      %24 = arith.mulf %18, %23 : vector<8x64xf32>
      %25 = arith.truncf %24 : vector<8x64xf32> to vector<8x64xbf16>
      %c0_18 = arith.constant 0 : index
      %c0_19 = arith.constant 0 : index
      %26 = vector.load %arg5[%c0_18, %c0_19] : memref<64x64xbf16, #tpu.memory_space<vmem>>, vector<64x64xbf16>
      %cst_20 = arith.constant dense<0.000000e+00> : vector<8x64xf32>
      %27 = tpu.matmul %25, %26, %cst_20 {dimension_numbers = #tpu.dot_dimension_numbers<[1], [0], [0], [1], [0, 0, 1, 1], [], []>} : vector<8x64xbf16>, vector<64x64xbf16>, vector<8x64xf32> -> vector<8x64xf32>
      %c0_21 = arith.constant 0 : index
      %c0_22 = arith.constant 0 : index
      %28 = vector.load %arg6[%c0_21, %c0_22] : memref<1x64xf32, #tpu.memory_space<vmem>>, vector<1x64xf32>
      %29 = vector.broadcast %28 : vector<1x64xf32> to vector<8x64xf32>
      %30 = arith.addf %27, %29 : vector<8x64xf32>
      %cst_23 = arith.constant 5.000000e-01 : f32
      %31 = vector.broadcast %cst_23 : f32 to vector<8x64xf32>
      %32 = arith.mulf %31, %30 : vector<8x64xf32>
      %cst_24 = arith.constant 0.707106769 : f32
      %33 = vector.broadcast %cst_24 : f32 to vector<8x64xf32>
      %34 = arith.mulf %30, %33 : vector<8x64xf32>
      %35 = math.erf %34 : vector<8x64xf32>
      %cst_25 = arith.constant 1.000000e+00 : f32
      %36 = vector.broadcast %cst_25 : f32 to vector<8x64xf32>
      %37 = arith.addf %36, %35 : vector<8x64xf32>
      %38 = arith.mulf %32, %37 : vector<8x64xf32>
      %39 = arith.truncf %38 : vector<8x64xf32> to vector<8x64xbf16>
      %c0_26 = arith.constant 0 : index
      %c0_27 = arith.constant 0 : index
      %40 = vector.load %arg7[%c0_26, %c0_27] : memref<64x128xbf16, #tpu.memory_space<vmem>>, vector<64x128xbf16>
      %cst_28 = arith.constant dense<0.000000e+00> : vector<8x128xf32>
      %41 = tpu.matmul %39, %40, %cst_28 {dimension_numbers = #tpu.dot_dimension_numbers<[1], [0], [0], [1], [0, 0, 1, 1], [], []>} : vector<8x64xbf16>, vector<64x128xbf16>, vector<8x128xf32> -> vector<8x128xf32>
      %c0_29 = arith.constant 0 : index
      %c0_30 = arith.constant 0 : index
      %42 = vector.load %arg8[%c0_29, %c0_30] : memref<1x128xf32, #tpu.memory_space<vmem>>, vector<1x128xf32>
      %43 = vector.broadcast %42 : vector<1x128xf32> to vector<8x128xf32>
      %44 = arith.addf %41, %43 : vector<8x128xf32>
      %45 = arith.mulf %44, %44 : vector<8x128xf32>
      %cst_31 = arith.constant dense<0.000000e+00> : vector<8xf32>
      %46 = vector.multi_reduction <add>, %45, %cst_31 [1] : vector<8x128xf32> to vector<8xf32>
      %47 = vector.shape_cast %46 : vector<8xf32> to vector<8x1xf32>
      %cst_32 = arith.constant 1.000000e-24 : f32
      %48 = vector.broadcast %cst_32 : f32 to vector<8x1xf32>
      %49 = arith.maximumf %47, %48 : vector<8x1xf32>
      %50 = math.rsqrt %49 : vector<8x1xf32>
      %51 = vector.broadcast %50 : vector<8x1xf32> to vector<8x128xf32>
      %52 = arith.mulf %44, %51 : vector<8x128xf32>
      %53 = arith.truncf %52 : vector<8x128xf32> to vector<8x128xbf16>
      %c0_33 = arith.constant 0 : index
      %c0_34 = arith.constant 0 : index
      %54 = vector.load %arg12[%c0_33, %c0_34] : memref<8x128xbf16, #tpu.memory_space<vmem>>, vector<8x128xbf16>
      tpu.vector_store %arg12[%c0_33, %c0_34], %53 {strides = array<i32>} : memref<8x128xbf16, #tpu.memory_space<vmem>>, vector<8x128xbf16>,
    } else {
    }
    %c0 = arith.constant 0 : index
    %c0_1 = arith.constant 0 : index
    %3 = vector.load %arg12[%c0, %c0_1] : memref<8x128xbf16, #tpu.memory_space<vmem>>, vector<8x128xbf16>
    %c0_2 = arith.constant 0 : index
    %c0_3 = arith.constant 0 : index
    %4 = vector.load %arg9[%c0_2, %c0_3] : memref<128x128xbf16, #tpu.memory_space<vmem>>, vector<128x128xbf16>
    %cst = arith.constant dense<0.000000e+00> : vector<8x128xf32>
    %5 = tpu.matmul %3, %4, %cst {dimension_numbers = #tpu.dot_dimension_numbers<[1], [0], [0], [1], [0, 0, 1, 1], [], []>} : vector<8x128xbf16>, vector<128x128xbf16>, vector<8x128xf32> -> vector<8x128xf32>
    %c0_4 = arith.constant 0 : index
    %c0_5 = arith.constant 0 : index
    %6 = vector.load %arg10[%c0_4, %c0_5] : memref<1x128xf32, #tpu.memory_space<vmem>>, vector<1x128xf32>
    %7 = vector.broadcast %6 : vector<1x128xf32> to vector<8x128xf32>
    %8 = arith.mulf %5, %7 : vector<8x128xf32>
    %9 = arith.truncf %8 : vector<8x128xf32> to vector<8x128xbf16>
    %c0_6 = arith.constant 0 : index
    %c0_7 = arith.constant 0 : index
    %10 = vector.load %arg11[%c0_6, %c0_7] : memref<8x128xbf16, #tpu.memory_space<vmem>>, vector<8x128xbf16>
    tpu.vector_store %arg11[%c0_6, %c0_7], %9 {strides = array<i32>} : memref<8x128xbf16, #tpu.memory_space<vmem>>, vector<8x128xbf16>,
    return
  }
  func.func @transform_0(%arg0: i32, %arg1: i32) -> (i32, i32) {
    %c0_i32 = arith.constant 0 : i32
    %c0_i32_0 = arith.constant 0 : i32
    return %arg0, %c0_i32 : i32, i32
  }
  func.func @transform_1(%arg0: i32, %arg1: i32) -> (i32, i32) {
    %c0_i32 = arith.constant 0 : i32
    %c0_i32_0 = arith.constant 0 : i32
    %c0_i32_1 = arith.constant 0 : i32
    return %c0_i32, %c0_i32_0 : i32, i32
  }
  func.func @transform_2(%arg0: i32, %arg1: i32) -> (i32, i32) {
    %c0_i32 = arith.constant 0 : i32
    %c0_i32_0 = arith.constant 0 : i32
    %c0_i32_1 = arith.constant 0 : i32
    return %c0_i32, %c0_i32_0 : i32, i32
  }
  func.func @transform_3(%arg0: i32, %arg1: i32) -> (i32, i32) {
    %c0_i32 = arith.constant 0 : i32
    %c0_i32_0 = arith.constant 0 : i32
    %c0_i32_1 = arith.constant 0 : i32
    return %c0_i32, %c0_i32_0 : i32, i32
  }
  func.func @transform_4(%arg0: i32, %arg1: i32) -> (i32, i32) {
    %c0_i32 = arith.constant 0 : i32
    %c0_i32_0 = arith.constant 0 : i32
    %c0_i32_1 = arith.constant 0 : i32
    return %c0_i32, %c0_i32_0 : i32, i32
  }
  func.func @transform_5(%arg0: i32, %arg1: i32) -> (i32, i32) {
    %c0_i32 = arith.constant 0 : i32
    %c0_i32_0 = arith.constant 0 : i32
    %c0_i32_1 = arith.constant 0 : i32
    return %c0_i32, %c0_i32_0 : i32, i32
  }
  func.func @transform_6(%arg0: i32, %arg1: i32) -> (i32, i32) {
    %c0_i32 = arith.constant 0 : i32
    %c0_i32_0 = arith.constant 0 : i32
    %c0_i32_1 = arith.constant 0 : i32
    return %c0_i32, %c0_i32_0 : i32, i32
  }
  func.func @transform_7(%arg0: i32, %arg1: i32) -> (i32, i32) {
    %c0_i32 = arith.constant 0 : i32
    %c0_i32_0 = arith.constant 0 : i32
    return %c0_i32, %arg1 : i32, i32
  }
  func.func @transform_8(%arg0: i32, %arg1: i32) -> (i32, i32) {
    %c0_i32 = arith.constant 0 : i32
    %c0_i32_0 = arith.constant 0 : i32
    return %c0_i32, %arg1 : i32, i32
  }
  func.func @transform_9(%arg0: i32, %arg1: i32) -> (i32, i32) {
    %c0_i32 = arith.constant 0 : i32
    return %arg0, %arg1 : i32, i32
  }
}

</mosaic_0001>

<bundles_post_ra>
// kernel: tpu_custom_call.1
= control target key start
LH: loop header
LB: loop body
LE: loop exit
PB: predicated region body
PF: predicated region fallthrough
CT: control target
= control target key end

     0   :  { %s2039_s0 = inlined_call_operand.hbm [shape: bf16[16,32], index: 0, kind: input, shape index: {}]   ;;  %s2040_s1 = inlined_call_operand.hbm [shape: bf16[32,64], index: 1, kind: input, shape index: {}]   ;;  %s2041_s2 = inlined_call_operand.vmem [shape: f32[1,64], index: 2, kind: input, shape index: {}]   ;;  %s2042_s3 = inlined_call_operand.hbm [shape: bf16[64,64], index: 3, kind: input, shape index: {}]   ;;  %s2043_s4 = inlined_call_operand.vmem [shape: f32[1,64], index: 4, kind: input, shape index: {}]   ;;  %s2044_s5 = inlined_call_operand.hbm [shape: bf16[64,128], index: 5, kind: input, shape index: {}]   ;;  %s2045_s6 = inlined_call_operand.vmem [shape: f32[1,128], index: 6, kind: input, shape index: {}]   ;;  %s2046_s7 = inlined_call_operand.hbm [shape: bf16[128,256], index: 7, kind: input, shape index: {}]   ;;  %s2047_s8 = inlined_call_operand.vmem [shape: f32[1,256], index: 8, kind: input, shape index: {}]   ;;  %s2048_s9 = inlined_call_operand.hbm [shape: bf16[16,256], index: 9, kind: output, shape index: {}]  }
   0x1   :  { %2080 = sst [smem:[#allocation32_spill]] %s2039_s0 }
   0x2   :  { %2081 = sst [smem:[#allocation33_spill]] %s2040_s1 }
   0x3   :  { %2082 = sst [smem:[#allocation34_spill]] %s2041_s2 }
   0x4   :  { %2083 = sst [smem:[#allocation35_spill]] %s2043_s4 }
   0x5   :  { %2084 = sst [smem:[#allocation36_spill]] %s2045_s6 }
   0x6   :  { %2085 = sst [smem:[#allocation37_spill]] %s2047_s8 }
   0x7   :  { %2086 = sst [smem:[#allocation38_spill]] %s2048_s9 }
   0x8   :  { %14 = vsyncpa [#allocation4], 0 }
   0x9   :  { %16 = vsyncpa [#allocation4 + $0x1], 0 }
   0xa   :  { %17 = vsyncpa [#allocation7], 0 }
   0xb   :  { %18 = vsyncpa [#allocation10], 0 }
   0xc   :  { %19 = vsyncpa [#allocation5], 0 }
   0xd   :  { %21 = vsyncpa [#allocation5 + $0x1], 0  ;;  %s1657_s30 = smov 0   ;;  %s1659_s10 = smov 0  }
   0xe   :  { %s1661_s11 = smov 0   ;;  %s1663_s12 = smov 0  }
   0xf   :  { %s1665_s13 = smov 0   ;;  %s1667_s14 = smov 0  }
  0x10   :  { %s1669_s15 = smov 0   ;;  %s1671_s16 = smov 0  }
  0x11   :  { %s1673_s17 = smov 0   ;;  %s1675_s18 = smov 0  }
  0x12   :  { %s1677_s19 = smov 0   ;;  %s1679_s20 = smov 0  }
  0x13   :  { %s1681_s21 = smov 0   ;;  %s1683_s22 = smov 0  }
  0x14 LB: > { %2087 = sst [smem:[#allocation18_spill]] %s1540_s30  ;;  %s1726_s23 = sadd.s32 4294967295, %s1592_s22   ;;  %s1592_s22 = sphi %s1683_s22, %s27_s22   ;;  %s1588_s21 = sphi %s1681_s21, %s2165_s21   ;;  %s1584_s20 = sphi %s1679_s20, %s2164_s20   ;;  %s1580_s19 = sphi %s1677_s19, %s2163_s19   ;;  %s1576_s18 = sphi %s1675_s18, %s2162_s18   ;;  %s1572_s17 = sphi %s1673_s17, %s2161_s17   ;;  %s1568_s16 = sphi %s1671_s16, %s2160_s16   ;;  %s1564_s15 = sphi %s1669_s15, %s2152_s15   ;;  %s1560_s14 = sphi %s1667_s14, %s2159_s14   ;;  %s1556_s13 = sphi %s1665_s13, %s2158_s13   ;;  %s1552_s12 = sphi %s1663_s12, %s2151_s12   ;;  %s1548_s11 = sphi %s1661_s11, %s2157_s11   ;;  %s1544_s10 = sphi %s1659_s10, %s2156_s10   ;;  %s1540_s30 = sphi %s1657_s30, %s2149_s30  }
  0x15   : > { %2088 = sst [smem:[#allocation19_spill]] %s1544_s10  ;;  %s987_s24 = sadd.s32 4294967294, %s1592_s22  }
  0x16   : > { %2089 = sst [smem:[#allocation20_spill]] %s1556_s13  ;;  %p2073_p0 = scmp.eq.s32.totalorder %s1726_s23, 0 }
  0x17   : > { %2090 = sst [smem:[#allocation21_spill]] %s1568_s16  ;;  %p211_p1 = scmp.ne.s32.totalorder %s1556_s13, %s1552_s12 }
  0x18   : > { %2091 = sst [smem:[#allocation22_spill]] %s1576_s18  ;;  %p262_p2 = scmp.ne.s32.totalorder %s1548_s11, %s1544_s10 }
  0x19   : > { %2092 = sst [smem:[#allocation23_spill]] %s1580_s19  ;;  %p263_p3 = scmp.eq.s32.totalorder %s1726_s23, 3 }
  0x1a   : > { %2093 = sst [smem:[#allocation24_spill]] %s1726_s23  ;;  %p1736_p4 = por %p211_p1, %p2073_p0 }
  0x1b   : > { %p268_p5 = scmp.ne.s32.totalorder %s1544_s10, %s1540_s30  ;;  %p1742_p6 = por %p263_p3, %p262_p2 }
  0x1c   : > { %s2094_s25 = scalar_select %p1736_p4, 1, 0 }
  0x1d   : > { %s2096_s26 = scalar_select %p1742_p6, 1, 0 }
  0x1e   : > { %2095 = sst [smem:[#allocation25_spill]] %s2094_s25  ;;  %p269_p7 = scmp.eq.s32.totalorder %s987_s24, 3 }
  0x1f   : > { %2097 = sst [smem:[#allocation26_spill]] %s2096_s26  ;;  %p988_p8 = scmp.ge.s32.totalorder %s1592_s22, 1 }
  0x20   : > { %p276_p9 = scmp.lt.s32.totalorder %s1592_s22, 5  ;;  %p1748_p10 = por %p269_p7, %p268_p5 }
  0x21   : > { %s1594_s29 = smov [#allocation6]  }
  0x22   : > { %s2098_s27 = scalar_select %p1748_p10, 1, 0 }
  0x23   : > { %p1752_p11 = pnand %p988_p8, %p276_p9  ;;  %s288_s12 = sshll.u32 %s1594_s29, 4  ;;  %s289_s12 = int_to_ptr.vmem [resolvable:$true] %s288_s12 }
  0x24   : > { %2099 = sst [smem:[#allocation27_spill]] %s2098_s27  ;;  %s1313_s24 = scalar_lea.vmem %s289_s12, 256 }
  0x25   : > { %s2100_s28 = scalar_select %p1752_p11, 1, 0 }
  0x26   : > { %p1127_p12 = pneg %p1752_p11  ;;  %p1314_p2 = scmp.ne.s32.totalorder %s289_s12, %s1313_s24 }
  0x27   : > { %2101 = sst [smem:[#allocation28_spill]] %s2100_s28  ;;  %p1321_p7 = scmp.lt.s32.totalorder %s289_s12, %s289_s12 }
  0x28   : > { %p1760_p13 = pnand %p1127_p12, %p2073_p0  ;;  %p1322_p8 = scmp.lt.s32.totalorder %s1313_s24, %s1313_s24 }
  0x2a   : > { %p2058_p1 = pneg %p1760_p13  ;;  %p1323_p9 = por %p1322_p8, %p1321_p7 }
  0x2c   : > { %p1316_p3 = pnand %p1314_p2, %p2058_p1 }
  0x2e   : > { %p1317_p5 = pneg %p1316_p3 }
  0x30   : > { %p1324_p10 = pnand %p1323_p9, %p1317_p5 }
  0x32   : > { %1327 = shalt.err (!%p1324_p10)
}
  0x33   : > { %s2054_s29 = smov 64   ;;  %s2056_s27 = smov 4  }
  0x34   : > { %s2103_s1 = sld [smem:[#allocation33_spill]]  ;;  %s36_s26 = sadd.s32 1, %s1584_s20 }
  0x35   : > { %s39_s19 = sadd.s32 1, %s1588_s21  ;;  %p37_p10 = scmp.ge.s32.totalorder %s36_s26, 2 }
  0x36   : > { %s46_s6 = sadd.s32 1, %s1572_s17  ;;  %p53_p12 = scmp.ne.s32.totalorder %s1572_s17, %s1568_s16 }
  0x37   : > { %p54_p2 = scmp.eq.s32.totalorder %s1592_s22, 0  ;;  %s2167_s26 = smov (%p37_p10, %s36_s26), 0 }
  0x38   : > { %2104 = sst [smem:[#allocation29_spill]] %s2167_s26  ;;  %s2169_s19 = smov (!%p37_p10, %s39_s19), %s1588_s21 }
  0x39   : > { %p1788_p3 = por %p54_p2, %p53_p12  ;;  %p59_p5 = scmp.ne.s32.totalorder %s1568_s16, %s1564_s15 }
  0x3a   : > { %1130 = dma.hbm_to_vmem [thread:$0]  (!%p1760_p13), %s2103_s1, 256, %s289_s12, [#allocation7], %s2054_s29, %s2054_s29, %s2056_s27  }
  0x3b   : > { %p41_p7 = scmp.ge.s32.totalorder %s2169_s19, 2  ;;  %s195_s12 = ssub.s32 %s1584_s20, %s2167_s26 }
  0x3c   : > { %p1798_p8 = por %p2073_p0, %p59_p5  ;;  %p196_p9 = scmp.eq.s32.totalorder %s195_s12, 0 }
  0x3d   : > { %s2171_s19 = smov (%p41_p7, %s2169_s19), 0  ;;  %s198_s29 = sadd.s32 1, %s1560_s14 }
  0x3e   : > { %s2106_s24 = scalar_select %p1798_p8, 1, 0 }
  0x3f   : > { %2108 = sst [smem:[#allocation31_spill]] %s2171_s19  ;;  %p205_p10 = scmp.ne.s32.totalorder %s1560_s14, %s1556_s13 }
  0x40   : > { %2107 = sst [smem:[#allocation30_spill]] %s2106_s24  ;;  %s43_s27 = ssub.s32 %s1588_s21, %s2171_s19 }
  0x41   : > { %s252_s1 = sadd.s32 1, %s1548_s11  ;;  %p44_p12 = scmp.eq.s32.totalorder %s43_s27, 0 }
  0x42   : > { %p1812_p1 = por %p205_p10, %p54_p2  ;;  %s249_s2 = sor.u32 %s195_s12, %s43_s27 }
  0x43   : > { %s1817_s26 = scalar_select %p196_p9, %s1560_s14, %s198_s29  }
  0x44   : > { %s1820_s4 = scalar_select %p44_p12, %s1572_s17, %s46_s6  }
  0x45   : > { %p1151_p5 = scmp.lt.s32.totalorder %s1592_s22, 4  ;;  %p250_p7 = scmp.eq.s32.totalorder %s249_s2, 0 }
  0x46   : > { %s337_s8 = sand.u32 1, %s1592_s22   ;;  %s339_s18 = sand.u32 1, %s1572_s17  }
  0x47   : > { %s1826_s10 = scalar_select %p250_p7, %s1548_s11, %s252_s1  }
  0x48   : > { %s993_s19 = sshll.u32 %s339_s18, 2  ;;  %s994_s25 = sshll.u32 %s1588_s21, 6 }
  0x49   : > { %s2110_s0 = sld [smem:[#allocation32_spill]]  ;;  %s341_s23 = scalar_lea.vmem [#allocation3], %s993_s19 }
  0x4a   : > { %s348_s28 = sshll.u32 %s341_s23, 4  ;;  %p1834_p2 = pnand %p1151_p5, %p1788_p3  ;;  %s349_s28 = int_to_ptr.vmem [resolvable:$true] %s348_s28 }
  0x4b   : > { %p1840_p9 = pnand %p1151_p5, %p1812_p1  ;;  %s1844_s1 = scalar_lea.sflag [#allocation4], %s337_s8 }
  0x4c   : > { %p1330_p10 = pneg %p1834_p2  ;;  %s1341_s6 = scalar_lea.vmem %s349_s28, 64 }
  0x4d   : > { %s2112_s2 = scalar_select %p1840_p9, 1, 0 }
  0x4e   : > { %p1342_p12 = scmp.ne.s32.totalorder %s349_s28, %s1341_s6  ;;  %s1597_s13 = smov [#allocation3]  }
  0x4f   : > { %s346_s16 = scalar_lea.hbm %s2110_s0, %s994_s25  ;;  %s1346_s18 = sshll.u32 %s1597_s13, 4  ;;  %s1347_s18 = int_to_ptr.vmem [resolvable:$false] %s1346_s18 }
  0x50   : > { %p1344_p7 = pnand %p1342_p12, %p1330_p10  ;;  %s1348_s19 = scalar_lea.vmem %s1347_s18, 128 }
  0x51   : > { %p1349_p3 = scmp.lt.s32.totalorder %s349_s28, %s1347_s18  ;;  %p1350_p6 = scmp.lt.s32.totalorder %s1348_s19, %s1341_s6 }
  0x52   : > { %p1345_p0 = pneg %p1344_p7 }
  0x53   : > { %p1351_p4 = por %p1350_p6, %p1349_p3 }
  0x55   : > { %p1352_p8 = pnand %p1351_p4, %p1345_p0 }
  0x57   : > { %1355 = shalt.err (!%p1352_p8)
}
  0x58   : > { %1140 = dma.hbm_to_vmem [thread:$0]  (!%p1834_p2), %s346_s16, 64, %s349_s28, %s1844_s1  }
  0x59   : > { %s1598_s8 = smov [#allocation8]   ;;  %p2113_p5 = pneg %p1760_p13 }
  0x5a   : > { %s304_s23 = sshll.u32 %s1598_s8, 4  ;;  %s305_s23 = int_to_ptr.vmem [resolvable:$true] %s304_s23 }
  0x5b   : > { %s1367_s25 = scalar_lea.vmem %s305_s23, 512  ;;  %p1375_p7 = scmp.lt.s32.totalorder %s305_s23, %s305_s23 }
  0x5c   : > { %p1368_p1 = scmp.ne.s32.totalorder %s305_s23, %s1367_s25  ;;  %p1376_p11 = scmp.lt.s32.totalorder %s1367_s25, %s1367_s25 }
  0x5e   : > { %p1370_p10 = pnand %p1368_p1, %p2113_p5  ;;  %p1377_p9 = por %p1376_p11, %p1375_p7 }
  0x60   : > { %p1371_p12 = pneg %p1370_p10 }
  0x62   : > { %p1378_p6 = pnand %p1377_p9, %p1371_p12 }
  0x64   : > { %1381 = shalt.err (!%p1378_p6)
}
  0x65   : > { %s2114_s27 = smov 4   ;;  %s2115_s9 = smov 64  }
  0x66   : > { %1133 = dma.hbm_to_vmem [thread:$0]  (!%p1760_p13), %s2042_s3, 512, %s305_s23, [#allocation7], %s2115_s9, %s2115_s9, %s2114_s27  }
  0x67   : > { %s1599_s12 = smov [#allocation9]   ;;  %s357_s15 = sand.u32 1, %s1560_s14  }
  0x68   : > { %s320_s24 = sshll.u32 %s1599_s12, 4  ;;  %s995_s29 = sshll.u32 %s357_s15, 6  ;;  %s321_s24 = int_to_ptr.vmem [resolvable:$true] %s320_s24 }
  0x69   : > { %s1393_s6 = scalar_lea.vmem %s321_s24, 512  ;;  %p2116_p4 = pmov %p2113_p5 }
  0x6a   : > { %p1394_p0 = scmp.ne.s32.totalorder %s321_s24, %s1393_s6  ;;  %p1401_p2 = scmp.lt.s32.totalorder %s321_s24, %s321_s24 }
  0x6b   : > { %p1402_p9 = scmp.lt.s32.totalorder %s1393_s6, %s1393_s6 }
  0x6c   : > { %p1396_p11 = pnand %p1394_p0, %p2116_p4 }
  0x6d   : > { %p1403_p3 = por %p1402_p9, %p1401_p2 }
  0x6e   : > { %p1397_p8 = pneg %p1396_p11 }
  0x70   : > { %p1404_p1 = pnand %p1403_p3, %p1397_p8 }
  0x72   : > { %1407 = shalt.err (!%p1404_p1)
}
  0x73   : > { %1136 = dma.hbm_to_vmem [thread:$0]  (!%p1760_p13), %s2044_s5, 512, %s321_s24, [#allocation10], %s2115_s9, %s2115_s9, %s2114_s27  }
  0x74   : > { %s996_s19 = sshll.u32 %s1584_s20, 6  ;;  %s359_s16 = scalar_lea.vmem [#allocation11], %s995_s29 }
  0x75   : > { %s364_s25 = scalar_lea.hbm %s2046_s7, %s996_s19  ;;  %s365_s28 = sshll.u32 %s359_s16, 4  ;;  %s366_s28 = int_to_ptr.vmem [resolvable:$true] %s365_s28 }
  0x76   : > { %p2117_p5 = scmp.ne.s32.totalorder %s2112_s2, 0  ;;  %s1421_s30 = scalar_lea.vmem %s366_s28, 1024 }
  0x77   : > { %p1422_p12 = scmp.ne.s32.totalorder %s366_s28, %s1421_s30  ;;  %s1600_s12 = smov [#allocation11]  }
  0x78   : > { %p1410_p10 = pneg %p2117_p5  ;;  %s1426_s15 = sshll.u32 %s1600_s12, 4  ;;  %s1427_s15 = int_to_ptr.vmem [resolvable:$false] %s1426_s15 }
  0x79   : > { %s1428_s6 = scalar_lea.vmem %s1427_s15, 2048  ;;  %p1429_p0 = scmp.lt.s32.totalorder %s366_s28, %s1427_s15 }
  0x7a   : > { %p1424_p7 = pnand %p1422_p12, %p1410_p10  ;;  %p1430_p13 = scmp.lt.s32.totalorder %s1428_s6, %s1421_s30 }
  0x7c   : > { %p1425_p6 = pneg %p1424_p7  ;;  %p1431_p4 = por %p1430_p13, %p1429_p0 }
  0x7e   : > { %p1432_p11 = pnand %p1431_p4, %p1425_p6 }
  0x80   : > { %1435 = shalt.err (!%p1432_p11)
}
  0x81   : > { %s1601_s24 = smov 128   ;;  %s2118_s29 = sld [smem:[#allocation28_spill]] }
  0x82   : > { %1143 = dma.hbm_to_vmem [thread:$0]  (!%p2117_p5), %s364_s25, 1024, %s366_s28, %s1844_s1, %s1601_s24, %s2115_s9, %s2114_s27  }
  0x87   : > { %p2119_p8 = scmp.ne.s32.totalorder %s2118_s29, 0 }
  0x88   : > { %s2120_s13 = sld [smem:[#allocation24_spill]] (!%p2119_p8) }
  0x89   : > { %383 = sbr.rel (%p2119_p8) target bundleno = 1222 (0x4c6), region = 56  ;;  %s2121_s18 = sld [smem:[#allocation21_spill]] (!%p2119_p8) }
  0x8a   : > { %s2122_s19 = sld [smem:[#allocation30_spill]] (!%p2119_p8) }
  0x8e   : > { %s385_s8 = sand.u32 1, %s2120_s13  }
  0x8f   : > { %s387_s23 = sand.u32 1, %s2121_s18   ;;  %s386_s30 = scalar_lea.sflag [#allocation4], %s385_s8 }
  0x90   : > { %s1889_s16 = sshll.u32 %s387_s23, 2  ;;  %p2123_p2 = scmp.ne.s32.totalorder %s2122_s19, 0 }
  0x91   : > { %s389_s12 = scalar_lea.vmem [#allocation3], %s1889_s16 }
  0x92   : > { %1519 = dma.done.wait (%p2123_p2), %s386_s30, 64  }
  0x93   : > { %1521 = vsyncadd (%p2123_p2), %s386_s30, 4294967232  ;;  %p2124_p9 = scmp.eq.s32.totalorder %s2120_s13, 0 }
  0x95   : > { %1523 = dma.done.wait (%p2124_p9), [#allocation7], 768   ;;  %p2125_p3 = pmov %p2124_p9 }
  0x97   : > { %1525 = vsyncadd (%p2125_p3), [#allocation7], 4294966528  ;;  %p2126_p1 = pmov %p2125_p3 }
  0x99   : > { %1527 = dma.done.wait (%p2126_p1), [#allocation10], 512   ;;  %p2127_p5 = pmov %p2126_p1 }
  0x9a   : > { %s2128_s2 = sld [smem:[#allocation20_spill]] }
  0x9b   : > { %1529 = vsyncadd (%p2127_p5), [#allocation10], 4294966784  ;;  %s2129_s1 = sld [smem:[#allocation25_spill]] }
  0xa0   : > { %s408_s27 = sand.u32 1, %s2128_s2  }
  0xa1   : > { %s1002_s9 = sshll.u32 %s408_s27, 6  ;;  %p2130_p10 = scmp.ne.s32.totalorder %s2129_s1, 0 }
  0xa2   : > { %s1905_s25 = scalar_lea.vmem [#allocation11], %s1002_s9 }
  0xa3   : > { %1531 = dma.done.wait (%p2130_p10), %s386_s30, 1024  }
  0xa4   : > { %1533 = vsyncadd (%p2130_p10), %s386_s30, 4294966272  ;;  %s2131_s28 = sld [smem:[#allocation19_spill]] }
  0xa5   : > { %s2132_s15 = sld [smem:[#allocation22_spill]] }
  0xa6   : > { %s2133_s19 = sld [smem:[#allocation37_spill]] }
  0xaa   : > { %s2079_s6 = sand.u32 1, %s2131_s28  }
  0xab   : > { %p453_p12 = scmp.lt.s32.totalorder %s2132_s15, 1  ;;  %s1915_s24 = sshll.u32 %s2079_s6, 2 }
  0xac   : > { %s452_s23 = scalar_lea.vmem [#allocation12], %s1915_s24  ;;  %p1004_p7 = scmp.ne.s32.totalorder %s2132_s15, 0 }
  0xad   : > { %s1918_s29 = scalar_select %p453_p12, %s2132_s15, 1 }
  0xae   : > { %460 = sbr.rel (%p1004_p7) target bundleno = 978 (0x3d2), region = 80  ;;  %s2134_s1 = sld [smem:[#allocation34_spill]] (!%p1004_p7) }
  0xaf   : > { %s455_s8 = scalar_lea.vmem %s2133_s19, %s1918_s29  ;;  %s2135_s27 = sld [smem:[#allocation35_spill]] (!%p1004_p7) }
  0xb0   : > { %s2136_s15 = sld [smem:[#allocation36_spill]] (!%p1004_p7) }
  0xb3   : > { %v1278_v0 = vld [vmem:[#allocation6 + $0x8] sm:$0xff]   ;;  %v1602_v1 = vmov 0.0   ;;  %v1279_v2 = vld [vmem:[#allocation6] sm:$0xff]   ;;  %vm1603_vm0 = vmmov 0   ;;  %vm485_vm1 = vcmask 261120   ;;  %v1282_v6 = vld [vmem:[#allocation8 + $0x8] sm:$0xff]  }
  0xb4   : > { %1057 = vmatprep.subr.bf16.mxu0 %v1602_v1  ;;  %1065 = vmatprep.subr.bf16.mxu1 %v1602_v1  ;;  %v461_v3 = vld [vmem:[%s389_s12] sm:$0xf]  ;;  %v1280_v4 = vld [vmem:[#allocation8 + $0x18] sm:$0xff]   ;;  %v1281_v5 = vld [vmem:[#allocation8 + $0x10] sm:$0xff]   ;;  %vm574_vm2 = vcmask 523264  }
  0xb5   : > { %1058 = vmatpush3.bf16.msra.mxu0 %v1278_v0  ;;  %1061 = vmatprep.mubr.msk.bf16.mxu0 %vm1603_vm0, %v1602_v1  ;;  %v1283_v7 = vld [vmem:[#allocation8] sm:$0xff]   ;;  %v1284_v20 = vld [vmem:[#allocation9 + $0x18] sm:$0xff]   ;;  %v1285_v21 = vld [vmem:[#allocation9 + $0x10] sm:$0xff]  }
  0xb6   : > { %1059 = vmatprep.subr.bf16.mxu0 %v1602_v1  ;;  %1073 = vmatprep.mubr.msk.bf16.mxu1 %vm1603_vm0, %v1602_v1  ;;  %v1005_v8 = vld [vmem:[%s2134_s1] ss:$0 sm:$0xff]  ;;  %v1286_v22 = vld [vmem:[#allocation9 + $0x8] sm:$0xff]  }
  0xb7   : > { %1066 = vmatpush3.bf16.msra.mxu1 %v1280_v4  ;;  %v1287_v23 = vld [vmem:[#allocation9] sm:$0xff]  }
  0xb8   : > { %1067 = vmatprep.subr.bf16.mxu1 %v1602_v1  ;;  %v1009_v24 = vld [vmem:[%s2135_s27] ss:$0 sm:$0xff] }
  0xb9   : > { %1060 = vmatpush3.bf16.msra.mxu0 %v1279_v2  ;;  %v1015_v36 = vld [vmem:[%s2136_s15] ss:$0 sm:$0xff] }
  0xba   : > { %1077 = vmatprep.subr.bf16.mxu0 %v1602_v1 }
  0xbb   : > { %1068 = vmatpush3.bf16.msra.mxu1 %v1281_v5 }
  0xbc   : > { %1062 = vmatmul.mubr.msk.bf16.vlgmr.msra.gmra.mxu0 %vm485_vm1, %v461_v3  ;;  %1069 = vmatprep.subr.bf16.mxu1 %v1602_v1 }
  0xbd   : > { %1085 = vmatprep.mubr.msk.bf16.mxu0 %vm1603_vm0, %v1602_v1  ;;  %1078 = vmatpush3.bf16.msra.mxu0 %v1284_v20 }
  0xbe   : > { %1079 = vmatprep.subr.bf16.mxu0 %v1602_v1 }
  0xbf   : > { %1070 = vmatpush3.bf16.msra.mxu1 %v1282_v6 }
  0xc0   : > { %1071 = vmatprep.subr.bf16.mxu1 %v1602_v1 }
  0xc1   : > { %1080 = vmatpush3.bf16.msra.mxu0 %v1285_v21 }
  0xc2   : > { %1081 = vmatprep.subr.bf16.mxu0 %v1602_v1 }
  0xc3   : > { %1072 = vmatpush3.bf16.msra.mxu1 %v1283_v7 }
  0xc5   : > { %1082 = vmatpush3.bf16.msra.mxu0 %v1286_v22 }
  0xc6   : > { %1083 = vmatprep.subr.bf16.mxu0 %v1602_v1 }
  0xc9   : > { %1084 = vmatpush3.bf16.msra.mxu0 %v1287_v23 }
 0x17c   : > { %v523_v9 = vpop.f32.mrf.mxu0 }
 0x17d   : > { %v524_v10 = vadd.f32 %v1005_v8, %v523_v9 }
 0x17e   : > { %v1063_v11 = vpop.f32.mrf.mxu0 }
 0x17f   : > { %v530_v12 = vmul.f32 0.70710677, %v524_v10  ;;  %v529_v16 = vmul.f32 0.5, %v524_v10 }
 0x180   : > { %v526_v13 = vpop.f32.mrf.mxu0 }
 0x181   : > { %1288 = verf.f32 %v530_v12 }
 0x182   : > { %v1064_v14 = vpop.f32.mrf.mxu0 }
 0x18e   : > { %v1289_v15 = vpop.eup %1288 }
 0x18f   : > { %v532_v17 = vadd.f32 1.0, %v1289_v15 }
 0x191   : > { %v533_v18 = vmul.f32 %v532_v17, %v529_v16 }
 0x193   : > { %v534_v19 = vpack.c.bf16 %v533_v18, %v533_v18 }
 0x195   : > { %1074 = vmatmul.mubr.msk.bf16.vlgmr.msra.gmra.mxu1 %vm574_vm2, %v534_v19 }
 0x255   : > { %v612_v25 = vpop.f32.mrf.mxu1 }
 0x256   : > { %v613_v26 = vadd.f32 %v1009_v24, %v612_v25 }
 0x257   : > { %v1075_v27 = vpop.f32.mrf.mxu1 }
 0x258   : > { %v619_v28 = vmul.f32 0.70710677, %v613_v26  ;;  %v618_v32 = vmul.f32 0.5, %v613_v26 }
 0x259   : > { %v615_v29 = vpop.f32.mrf.mxu1 }
 0x25a   : > { %1290 = verf.f32 %v619_v28 }
 0x25b   : > { %v1076_v30 = vpop.f32.mrf.mxu1 }
 0x267   : > { %v1291_v31 = vpop.eup %1290 }
 0x268   : > { %v621_v33 = vadd.f32 1.0, %v1291_v31 }
 0x26a   : > { %v622_v34 = vmul.f32 %v621_v33, %v618_v32 }
 0x26c   : > { %v623_v35 = vpack.c.bf16 %v622_v34, %v622_v34 }
 0x26e   : > { %1086 = vmatmul.mubr.msk.bf16.vlgmr.msra.gmra.mxu0 %vm574_vm2, %v623_v35 }
 0x32e   : > { %v700_v37 = vpop.f32.mrf.mxu0 }
 0x32f   : > { %v701_v38 = vadd.f32 %v1015_v36, %v700_v37 }
 0x330   : > { %v1087_v39 = vpop.f32.mrf.mxu0 }
 0x331   : > { %v706_v40 = vmul.f32 %v701_v38, %v701_v38 }
 0x332   : > { %v703_v41 = vpop.f32.mrf.mxu0 }
 0x333   : > { %707 = vadd.xlane.f32.xlu0 %v706_v40 }
 0x334   : > { %v1088_v42 = vpop.f32.mrf.mxu0 }
 0x3bc   : > { %v708_v43 = vpop.xlane.xlu0 %707 }
 0x3bd   : > { %v709_v44 = vmax.f32 %v708_v43, 1e-24 }
 0x3bf   : > { %1292 = vrsqrt.f32 %v709_v44 }
 0x3cc   : > { %v1293_v45 = vpop.eup %1292 }
 0x3cd   : > { %v711_v46 = vmul.f32 %v1293_v45, %v701_v38 }
 0x3cf   : > { %v712_v47 = vpack.c.bf16 %v711_v46, %v711_v46 }
 0x3d1   : > { %713 = vst [vmem:[#allocation2] sm:$0xf] %v712_v47 }
 0x3d2 PF: > { %v1294_v48 = vld [vmem:[%s1905_s25 + $0x38] sm:$0xff]   ;;  %v1604_v49 = vmov 0.0   ;;  %v1295_v50 = vld [vmem:[%s1905_s25 + $0x30] sm:$0xff]   ;;  %vm1605_vm3 = vmmov 0   ;;  %v1296_v51 = vld [vmem:[%s1905_s25 + $0x28] sm:$0xff]   ;;  %s2137_s13 = sld [smem:[#allocation23_spill]] }
 0x3d3   : > { %1089 = vmatprep.subr.bf16.mxu0 %v1604_v49  ;;  %1105 = vmatprep.mubr.msk.bf16.mxu0 %vm1605_vm3, %v1604_v49  ;;  %v1297_v52 = vld [vmem:[%s1905_s25 + $0x20] sm:$0xff]   ;;  %s2138_s18 = sld [smem:[#allocation22_spill]]  ;;  %v1298_v53 = vld [vmem:[%s1905_s25 + $0x18] sm:$0xff]   ;;  %v1299_v54 = vld [vmem:[%s1905_s25 + $0x10] sm:$0xff]   ;;  %s845_s28 = sshll.u32 %s452_s23, 4  ;;  %s1961_s28 = int_to_ptr.vmem [resolvable:$true] %s845_s28 }
 0x3d4   : > { %1090 = vmatpush3.bf16.msra.mxu0 %v1294_v48  ;;  %v1300_v55 = vld [vmem:[%s1905_s25 + $0x8] sm:$0xff]   ;;  %v1301_v56 = vld [vmem:[%s1905_s25] sm:$0xff]   ;;  %s2139_s19 = sld [smem:[#allocation19_spill]] }
 0x3d5   : > { %1091 = vmatprep.subr.bf16.mxu0 %v1604_v49  ;;  %s2141_s27 = sld [smem:[#allocation26_spill]]  ;;  %v1029_v58 = vld [vmem:[%s455_s8] ss:$0 sm:$0xff] }
 0x3d6   : > { %s2142_s6 = sld [smem:[#allocation38_spill]] }
 0x3d8   : > { %1092 = vmatpush3.bf16.msra.mxu0 %v1295_v50  ;;  %v714_v57 = vld [vmem:[#allocation2] sm:$0xf]  ;;  %s1031_s30 = sshll.u32 %s2137_s13, 1  ;;  %s1436_s13 = scalar_lea.vmem %s1961_s28, 64 }
 0x3d9   : > { %1093 = vmatprep.subr.bf16.mxu0 %v1604_v49  ;;  %s841_s2 = sadd.s32 %s2138_s18, %s1031_s30  ;;  %p1437_p6 = scmp.ne.s32.totalorder %s1961_s28, %s1436_s13 }
 0x3da   : > { %s1032_s9 = sshll.u32 %s841_s2, 6  ;;  %s2143_s29 = sand.u32 1, %s2139_s19  }
 0x3db   : > { %s830_s8 = scalar_lea.sflag [#allocation5], %s2143_s29  ;;  %p2144_p0 = scmp.ne.s32.totalorder %s2141_s27, 0 }
 0x3dc   : > { %1094 = vmatpush3.bf16.msra.mxu0 %v1296_v51  ;;  %s1959_s0 = scalar_lea.hbm %s2142_s6, %s1032_s9  ;;  %s1606_s18 = smov [#allocation12]  }
 0x3dd   : > { %1095 = vmatprep.subr.bf16.mxu0 %v1604_v49  ;;  %p1438_p13 = pnand %p1437_p6, %p2144_p0  ;;  %s1440_s30 = sshll.u32 %s1606_s18, 4  ;;  %s1441_s30 = int_to_ptr.vmem [resolvable:$false] %s1440_s30 }
 0x3de   : > { %s1442_s2 = scalar_lea.vmem %s1441_s30, 128  ;;  %p1443_p11 = scmp.lt.s32.totalorder %s1961_s28, %s1441_s30 }
 0x3df   : > { %p1439_p4 = pneg %p1438_p13  ;;  %p1444_p8 = scmp.lt.s32.totalorder %s1442_s2, %s1436_s13 }
 0x3e0   : > { %1096 = vmatpush3.bf16.msra.mxu0 %v1297_v52 }
 0x3e1   : > { %1097 = vmatprep.subr.bf16.mxu0 %v1604_v49  ;;  %p1445_p2 = por %p1444_p8, %p1443_p11 }
 0x3e3   : > { %p1446_p9 = pnand %p1445_p2, %p1439_p4 }
 0x3e4   : > { %1098 = vmatpush3.bf16.msra.mxu0 %v1298_v53 }
 0x3e5   : > { %1099 = vmatprep.subr.bf16.mxu0 %v1604_v49 }
 0x3e8   : > { %1100 = vmatpush3.bf16.msra.mxu0 %v1299_v54 }
 0x3e9   : > { %1101 = vmatprep.subr.bf16.mxu0 %v1604_v49 }
 0x3ec   : > { %1102 = vmatpush3.bf16.msra.mxu0 %v1300_v55 }
 0x3ed   : > { %1103 = vmatprep.subr.bf16.mxu0 %v1604_v49 }
 0x3f0   : > { %1104 = vmatpush3.bf16.msra.mxu0 %v1301_v56 }
 0x3f3   : > { %1106 = vmatmul.mubr.bf16.vlgmr.msra.gmra.mxu0 %v714_v57 }
 0x4b3   : > { %v813_v59 = vpop.f32.mrf.mxu0 }
 0x4b4   : > { %v826_v60 = vmul.f32 %v1029_v58, %v813_v59 }
 0x4b5   : > { %v1107_v61 = vpop.f32.mrf.mxu0 }
 0x4b6   : > { %v827_v62 = vpack.c.bf16 %v826_v60, %v826_v60 }
 0x4b7   : > { %v816_v63 = vpop.f32.mrf.mxu0 }
 0x4b8   : > { %828 = vst [vmem:[%s452_s23] sm:$0xf] %v827_v62 }
 0x4b9   : > { %v1108_v0 = vpop.f32.mrf.mxu0 }
 0x4ba   : > { %1449 = shalt.err (!%p1446_p9)
}
 0x4bb   : > { %s1450_s24 = scalar_lea.hbm %s1959_s0, 64  ;;  %s1454_s1 = scalar_lea.hbm %s2142_s6, 256 }
 0x4bc   : > { %p1451_p3 = scmp.ne.s32.totalorder %s1959_s0, %s1450_s24  ;;  %p1455_p10 = scmp.lt.s32.totalorder %s1959_s0, %s2142_s6 }
 0x4bd   : > { %p1456_p12 = scmp.lt.s32.totalorder %s1454_s1, %s1450_s24 }
 0x4be   : > { %p1452_p1 = pnand %p1451_p3, %p2144_p0 }
 0x4bf   : > { %p1457_p7 = por %p1456_p12, %p1455_p10 }
 0x4c0   : > { %p1453_p5 = pneg %p1452_p1 }
 0x4c2   : > { %p1458_p6 = pnand %p1457_p7, %p1453_p5 }
 0x4c4   : > { %1461 = shalt.err (!%p1458_p6)
}
 0x4c5   : > { %1125 = dma.vmem_to_hbm [thread:$0]  (%p2144_p0), %s1961_s28, 64, %s1959_s0, %s830_s8  }
 0x4c6 PF: > { %s2145_s9 = sld [smem:[#allocation18_spill]]  ;;  %p1155_p13 = scmp.ge.s32.totalorder %s1592_s22, 2 }
 0x4c7   : > { %s2146_s25 = sld [smem:[#allocation27_spill]] }
 0x4cc   : > { %s857_s15 = sand.u32 1, %s2145_s9  }
 0x4cd   : > { %p2147_p4 = scmp.ne.s32.totalorder %s2146_s25, 0  ;;  %s858_s29 = scalar_lea.sflag [#allocation5], %s857_s15 }
 0x4cf   : > { %p1145_p11 = pnand %p1155_p13, %p2147_p4 }
 0x4d1   : > { %p1146_p8 = pneg %p1145_p11 }
 0x4d3   : > { %1535 = dma.done.wait (%p1146_p8), %s858_s29, 64  }
 0x4d4   : > { %1537 = vsyncadd (%p1146_p8), %s858_s29, 4294967232  ;;  %s27_s22 = sadd.s32 1, %s1592_s22   ;;  %s2149_s30 = sld [smem:[#allocation19_spill]] }
 0x4d5   : > { %p1992_p2 = scmp.ge.s32.totalorder %s27_s22, 6   ;;  %s2150_s0 = smov %s1826_s10 }
 0x4d6   : > { %s2151_s12 = sld [smem:[#allocation20_spill]]  ;;  %s2156_s10 = smov %s1548_s11 }
 0x4d7   : > { %s2152_s15 = sld [smem:[#allocation21_spill]]  ;;  %s2157_s11 = smov %s2150_s0 }
 0x4d8   : > { %s2153_s27 = sld [smem:[#allocation29_spill]]  ;;  %s2158_s13 = smov %s1560_s14 }
 0x4d9   : > { %s2154_s28 = sld [smem:[#allocation31_spill]]  ;;  %s2159_s14 = smov %s1817_s26 }
 0x4da   : > { %s2160_s16 = smov %s1572_s17  ;;  %s2161_s17 = smov %s1820_s4 }
 0x4db   : > { %s2162_s18 = smov %s1584_s20  ;;  %s2163_s19 = smov %s1588_s21 }
 0x4dc   :  { %26 = sbr.rel (!%p1992_p2) target bundleno = 20 (0x14), region = 131 }
 0x4de   : > { %s2164_s20 = smov %s2153_s27 }
 0x4df   : > { %s2165_s21 = smov %s2154_s28 }
 0x4e1   :  { %863 = vsyncpa [#allocation4], 1 }
 0x4e2   :  { %865 = vsyncpa [#allocation4 + $0x1], 1 }
 0x4e3   :  { %866 = vsyncpa [#allocation7], 1 }
 0x4e4   :  { %867 = vsyncpa [#allocation10], 1 }
 0x4e5   :  { %868 = vsyncpa [#allocation5], 1 }
 0x4e6   :  { %870 = vsyncpa [#allocation5 + $0x1], 1 }

</bundles_post_ra>
